<compile_context>
chip_gen: v5e
topology: v5e:2x2
jax: 0.10.0
libtpu: 0.0.40
codegen_flags: <defaults>
</compile_context>

<pallas_src>
import functools

import numpy as np
import jax
import jax.numpy as jnp
from jax.experimental import pallas as pl
from jax.experimental.pallas import tpu as pltpu


# --------------------------------------------------------------------------- host helpers
def detect_change_points(sequence, num_splits):
    diffs = np.diff(sequence)
    abs_diffs = np.abs(diffs)
    if num_splits > 1:
        change_points = np.argsort(abs_diffs)[-(num_splits - 1):] + 1
        change_points.sort()
    else:
        change_points = []
    return change_points


def make_positional_table(max_len, d_model):
    pe = np.zeros((max_len, d_model), dtype=np.float32)
    position = np.arange(0, max_len, dtype=np.float32)[:, None]
    div_term = np.exp(np.arange(0, d_model, 2, dtype=np.float32)
                      * -(np.log(10000.0) / d_model))
    pe[:, 0::2] = np.sin(position * div_term)
    pe[:, 1::2] = np.cos(position * div_term)
    return jnp.asarray(pe)


def _ceil_to(x, m):
    return ((x + m - 1) // m) * m


# --------------------------------------------------------------------------- kernel helpers
def _layernorm(z, gamma, beta):
    mu = jnp.mean(z, axis=-1, keepdims=True)
    var = jnp.mean((z - mu) * (z - mu), axis=-1, keepdims=True)
    return (z - mu) * jax.lax.rsqrt(var + 1e-5) * gamma + beta


# --------------------------------------------------------------------------- global kernel
def _global_diag_kernel(batch, n_heads,
                        xin_ref, pos_ref, wemb_ref, wqk_ref, bqk_ref,
                        diag_ref):
    """Embedding + Q/K + softmax-diagonal, per batch; diag accumulated over (batch, head)."""
    f32 = jnp.float32
    bf16 = jnp.bfloat16
    d_model = wemb_ref.shape[1]
    e_dim = d_model // n_heads
    scale = 1.0 / float(e_dim) ** 0.5
    b = pl.program_id(0)

    @pl.when(b == 0)
    def _init():
        diag_ref[...] = jnp.zeros_like(diag_ref)

    # DataEmbedding: precomputed [x_prev | x | x_next | marks] slab -> one matmul + pos
    x_in = xin_ref[0]                                                # (L, 3C+M) bf16
    e = jnp.dot(x_in, wemb_ref[...], preferred_element_type=f32) + pos_ref[...]

    qk = jnp.dot(e.astype(bf16), wqk_ref[...], preferred_element_type=f32) + bqk_ref[...]
    # TODO(synk): at production d_model (multiple of 128) these lane slices are tile-aligned.
    q = qk[:, :d_model]
    k = qk[:, d_model:]

    acc = jnp.zeros((pos_ref.shape[0], 1), f32)
    for h in range(n_heads):
        qh = q[:, h * e_dim:(h + 1) * e_dim]
        kh = k[:, h * e_dim:(h + 1) * e_dim]
        s = jax.lax.dot_general(qh.astype(bf16), kh.astype(bf16),
                                (((1,), (1,)), ((), ())),
                                preferred_element_type=f32) * scale  # (L, L)
        rowmax = jnp.max(s, axis=-1, keepdims=True)
        rowsum = jnp.sum(jnp.exp(s - rowmax), axis=-1, keepdims=True)
        diag_s = jnp.sum(qh * kh, axis=-1, keepdims=True) * scale    # diag(s) directly
        # exact normalization: this value feeds the discrete change-point detection.
        acc = acc + jnp.exp(diag_s - rowmax) / rowsum
    diag_ref[...] = diag_ref[...] + acc

    @pl.when(b == batch - 1)
    def _finalize():
        diag_ref[...] = diag_ref[...] * (1.0 / float(batch * n_heads))


def run_global_diag(packed, emb_in_g, pos_g, n_heads):
    B, L, W = emb_in_g.shape
    D = packed['g_w_emb'].shape[1]
    kernel = functools.partial(_global_diag_kernel, B, n_heads)
    return pl.pallas_call(
        kernel,
        out_shape=jax.ShapeDtypeStruct((L, 1), jnp.float32),
        grid=(B,),
        in_specs=[
            pl.BlockSpec((1, L, W), lambda b: (b, 0, 0)),    # per-batch embedding-input slab
            pl.BlockSpec((L, D), lambda b: (0, 0)),          # positional table
            pl.BlockSpec((W, D), lambda b: (0, 0)),          # fused embedding weights (bf16)
            pl.BlockSpec((D, 2 * D), lambda b: (0, 0)),      # Wq|Wk (bf16)
            pl.BlockSpec((1, 2 * D), lambda b: (0, 0)),      # bq|bk (f32)
        ],
        out_specs=pl.BlockSpec((L, 1), lambda b: (0, 0)),    # resident accumulator
        compiler_params=pltpu.CompilerParams(
            dimension_semantics=("arbitrary",),
            vmem_limit_bytes=48 * 1024 * 1024),
    )(emb_in_g, pos_g, packed['g_w_emb'], packed['g_w_qk'], packed['g_b_qk'])


# --------------------------------------------------------------------------- local kernel
def _local_block_kernel(batch, lp, n_heads, npad,
                        seglen_ref,
                        xin_ref, pos_ref, wemb_ref, wqkv_ref, bqkv_ref, wo_ref, bo_ref,
                        ln_ref, w1_ref, b1_ref, w2_ref, b2_ref, wp_ref, bp_ref,
                        out_ref):
    """One (segment, group) branch: embed -> MHSA -> add&norm -> MLP -> add&norm -> proj."""
    f32 = jnp.float32
    bf16 = jnp.bfloat16
    n_rows = batch * lp
    d_model = wo_ref.shape[1]
    e_dim = d_model // n_heads
    scale = 1.0 / float(e_dim) ** 0.5

    seg_len = seglen_ref[pl.program_id(0)]                           # true segment length

    # --- DataEmbedding: precomputed slab -> one matmul + positional
    x_in = xin_ref[0, 0]                                             # (N, 3Cg+M) bf16
    e = jnp.dot(x_in, wemb_ref[0], preferred_element_type=f32) + pos_ref[...]

    # --- fused QKV projection (bf16 MXU inputs, f32 accumulation)
    qkv = jnp.dot(e.astype(bf16), wqkv_ref[0], preferred_element_type=f32) + bqkv_ref[0]
    # TODO(synk): at production d_model (multiple of 128) these lane slices are tile-aligned.
    q = qkv[:, :d_model]
    k = qkv[:, d_model:2 * d_model]
    v = qkv[:, 2 * d_model:]

    # keys at padded positions (>= seg_len) must not be attended to
    kpos = jax.lax.broadcasted_iota(jnp.int32, (lp, lp), 1)
    kvalid = kpos < seg_len                                          # (Lp, Lp), bcast over B

    # --- multi-head FullAttention: batched over B per head, Wo applied via per-head slices
    wo = wo_ref[0]
    attn_out = jnp.zeros((n_rows, d_model), f32)
    for h in range(n_heads):
        qh = q[:, h * e_dim:(h + 1) * e_dim].reshape(batch, lp, e_dim).astype(bf16)
        kh = k[:, h * e_dim:(h + 1) * e_dim].reshape(batch, lp, e_dim).astype(bf16)
        vh = v[:, h * e_dim:(h + 1) * e_dim].reshape(batch, lp, e_dim).astype(bf16)
        s = jnp.einsum('bqe,bke->bqk', qh, kh, preferred_element_type=f32) * scale
        s = jnp.where(kvalid, s, -1e30)
        s = s - jnp.max(s, axis=-1, keepdims=True)
        p = jnp.exp(s)
        a = p * pl.reciprocal(jnp.sum(p, axis=-1, keepdims=True), approx=True)
        o_h = jnp.einsum('bqk,bke->bqe', a.astype(bf16), vh,
                         preferred_element_type=f32)                 # (B, Lp, E)
        attn_out = attn_out + jnp.dot(
            o_h.reshape(n_rows, e_dim).astype(bf16),
            wo[h * e_dim:(h + 1) * e_dim, :], preferred_element_type=f32)
    attn_out = attn_out + bo_ref[0]

    ln = ln_ref[...]
    x1 = _layernorm(e + attn_out, ln[0:1], ln[1:2])

    h1 = jnp.dot(x1.astype(bf16), w1_ref[...], preferred_element_type=f32) + b1_ref[...]
    # TODO(synk): PyTorch nn.GELU() defaults to the exact erf GELU; tanh approximation used.
    gelu = 0.5 * h1 * (1.0 + jnp.tanh(0.7978845608028654 * (h1 + 0.044715 * h1 * h1 * h1)))
    mlp = jnp.dot(gelu.astype(bf16), w2_ref[...], preferred_element_type=f32) + b2_ref[...]
    x2 = _layernorm(x1 + mlp, ln[2:3], ln[3:4])

    # --- projection (d_model -> 1), emitted as a lane-dense padded (1, npad) row
    proj = jax.lax.dot_general(wp_ref[...], x2.astype(bf16),
                               (((1,), (1,)), ((), ())),
                               preferred_element_type=f32) + bp_ref[...]   # (1, N)
    if npad > n_rows:
        proj = jnp.concatenate([proj, jnp.zeros((1, npad - n_rows), f32)], axis=1)
    out_ref[0, 0] = proj


def run_local_blocks(packed, seg_lens, emb_in_l, pos_bl, n_heads, batch, lp, npad):
    S, G, N, W = emb_in_l.shape
    D = packed['l_w_o'].shape[1]
    dff = packed['w1'].shape[1]

    def rep(shape):
        return pl.BlockSpec(shape, lambda s, g, sl: (0,) * len(shape))

    def grp(arr):
        shp = (1,) + tuple(arr.shape[1:])
        return pl.BlockSpec(shp, lambda s, g, sl: (g,) + (0,) * (len(shp) - 1))

    in_specs = [
        pl.BlockSpec((1, 1, N, W), lambda s, g, sl: (s, g, 0, 0)),   # per (seg, group) slab
        rep((N, D)),                                                 # positional (tiled per B)
        grp(packed['l_w_emb']),                                      # fused embedding W (bf16)
        grp(packed['l_w_qkv']),                                      # Wq|Wk|Wv (bf16)
        grp(packed['l_b_qkv']),                                      # bq|bk|bv (f32)
        grp(packed['l_w_o']),                                        # Wo (bf16)
        grp(packed['l_b_o']),                                        # bo (f32)
        rep((4, D)),                                                 # ln1_g|ln1_b|ln2_g|ln2_b
        rep((D, dff)),                                               # W1 (bf16)
        rep((1, dff)),                                               # b1
        rep((dff, D)),                                               # W2 (bf16)
        rep((1, D)),                                                 # b2
        rep((1, D)),                                                 # wp^T (bf16)
        rep((1, 1)),                                                 # bp
    ]
    out_spec = pl.BlockSpec((1, 1, 1, npad), lambda s, g, sl: (s, g, 0, 0))
    kernel = functools.partial(_local_block_kernel, batch, lp, n_heads, npad)
    return pl.pallas_call(
        kernel,
        out_shape=jax.ShapeDtypeStruct((S, G, 1, npad), jnp.float32),
        grid_spec=pltpu.PrefetchScalarGridSpec(
            num_scalar_prefetch=1,
            grid=(S, G),
            in_specs=in_specs,
            out_specs=out_spec,
        ),
        compiler_params=pltpu.CompilerParams(
            dimension_semantics=("parallel", "parallel"),
            vmem_limit_bytes=48 * 1024 * 1024),
    )(seg_lens, emb_in_l, pos_bl,
      packed['l_w_emb'], packed['l_w_qkv'], packed['l_b_qkv'],
      packed['l_w_o'], packed['l_b_o'],
      packed['ln_pack'], packed['w1'], packed['b1'],
      packed['w2'], packed['b2'], packed['wp'], packed['bp'])


# --------------------------------------------------------------------------- parameters
def init_params(key, enc_in, d_model, d_ff, mark_dim, direction):
    groups = sorted(set(direction))
    kit = iter(jax.random.split(key, 128))

    def nrm(shape, std=0.02):
        return jax.random.normal(next(kit), shape, dtype=jnp.float32) * std

    def make_attn():
        return dict(wq=nrm((d_model, d_model)), wk=nrm((d_model, d_model)),
                    wv=nrm((d_model, d_model)), wo=nrm((d_model, d_model)),
                    bq=nrm((1, d_model)), bk=nrm((1, d_model)),
                    bv=nrm((1, d_model)), bo=nrm((1, d_model)))

    def make_emb(c_in):
        return dict(conv_w=nrm((3, c_in, d_model), std=0.1),         # taps: (t-1, t, t+1)
                    temp_w=nrm((mark_dim, d_model), std=0.1))

    dir_arr = np.array(direction)
    return dict(
        global_emb=make_emb(enc_in),
        time_attn=make_attn(),
        group_emb={g: make_emb(int((dir_arr == g).sum())) for g in groups},
        local_attn={g: make_attn() for g in groups},
        shared=dict(
            ln1_g=jnp.ones((1, d_model), jnp.float32),
            ln1_b=jnp.zeros((1, d_model), jnp.float32),
            ln2_g=jnp.ones((1, d_model), jnp.float32),
            ln2_b=jnp.zeros((1, d_model), jnp.float32),
            w1=nrm((d_model, d_ff)), b1=nrm((1, d_ff)),
            w2=nrm((d_ff, d_model)), b2=nrm((1, d_model)),
            wp=nrm((d_model, 1)), bp=nrm((1, 1)),
        ),
    )


def pack_params(params, direction):
    """Pack / stack module weights into the fused (bf16) layouts the kernels consume."""
    bf16 = jnp.bfloat16
    dir_arr = np.array(direction)
    groups = sorted(set(direction))
    shared = params['shared']

    ge = params['global_emb']
    g_w_emb = jnp.concatenate([ge['conv_w'][0], ge['conv_w'][1], ge['conv_w'][2],
                               ge['temp_w']], axis=0).astype(bf16)    # (3C+M, D)
    ta = params['time_attn']
    g_w_qk = jnp.concatenate([ta['wq'], ta['wk']], axis=1).astype(bf16)
    g_b_qk = jnp.concatenate([ta['bq'], ta['bk']], axis=1)

    group_channel_idx = [np.nonzero(dir_arr == g)[0] for g in groups]
    cg_max = max(len(idx) for idx in group_channel_idx)
    l_w_emb, l_w_qkv, l_b_qkv, l_w_o, l_b_o = [], [], [], [], []
    for g, idx in zip(groups, group_channel_idx):
        emb = params['group_emb'][g]
        cw = jnp.pad(emb['conv_w'], ((0, 0), (0, cg_max - len(idx)), (0, 0)))
        l_w_emb.append(jnp.concatenate([cw[0], cw[1], cw[2], emb['temp_w']], axis=0))
        at = params['local_attn'][g]
        l_w_qkv.append(jnp.concatenate([at['wq'], at['wk'], at['wv']], axis=1))
        l_b_qkv.append(jnp.concatenate([at['bq'], at['bk'], at['bv']], axis=1))
        l_w_o.append(at['wo'])
        l_b_o.append(at['bo'])

    return dict(
        g_w_emb=g_w_emb, g_w_qk=g_w_qk, g_b_qk=g_b_qk,
        l_w_emb=jnp.stack(l_w_emb, 0).astype(bf16),                   # (G, 3Cg+M, D)
        l_w_qkv=jnp.stack(l_w_qkv, 0).astype(bf16),                   # (G, D, 3D)
        l_b_qkv=jnp.stack(l_b_qkv, 0),                                # (G, 1, 3D)
        l_w_o=jnp.stack(l_w_o, 0).astype(bf16),                       # (G, D, D)
        l_b_o=jnp.stack(l_b_o, 0),                                    # (G, 1, D)
        ln_pack=jnp.concatenate([shared['ln1_g'], shared['ln1_b'],
                                 shared['ln2_g'], shared['ln2_b']], axis=0),
        w1=shared['w1'].astype(bf16), b1=shared['b1'],
        w2=shared['w2'].astype(bf16), b2=shared['b2'],
        wp=shared['wp'].T.astype(bf16), bp=shared['bp'],
        groups=groups,
        group_channel_idx=group_channel_idx,
        cg_max=cg_max,
        chan_group=np.array([groups.index(d) for d in direction], dtype=np.int32),
    )


# --------------------------------------------------------------------------- full forward
def model_forward(packed, x_enc, x_mark_enc, x_dec, x_mark_dec, *,
                  pred_len, n_heads, pos_table):
    B, L, C = x_enc.shape
    M = x_mark_enc.shape[-1]
    D = pos_table.shape[1]

    # --- global branch: only the (batch, head)-averaged attention diagonal is consumed.
    emb_in_g = jnp.concatenate(
        [jnp.roll(x_enc, 1, axis=1), x_enc, jnp.roll(x_enc, -1, axis=1), x_mark_enc],
        axis=-1).astype(jnp.bfloat16)                                 # (B, L, 3C+M)
    diag = run_global_diag(packed, emb_in_g, pos_table[:L], n_heads)  # (L, 1)
    attention_sequence = np.asarray(jax.device_get(diag))[:, 0]
    # TODO(synk): data-dependent split mirrors torch's .detach().cpu().numpy() round trip.
    change_points = detect_change_points(attention_sequence, 2)
    split_points = [0] + [int(c) for c in change_points] + [L]
    S = len(split_points) - 1

    # --- local branch: all (segment, group) pairs, padded to one fixed shape -> the
    #     Pallas kernel compiles ONCE regardless of where the change point lands.
    G = len(packed['groups'])
    cg_max = packed['cg_max']
    Lp = max(8, _ceil_to(L, 8))                   # fixed, 8-aligned padded segment length
    N = B * Lp
    npad = max(128, _ceil_to(N, 128))             # lane-dense padded output width

    seg_lens, emb_slabs = [], []
    for i in range(S):
        st, en = split_points[i], split_points[i + 1]
        sl = en - st
        seg_lens.append(sl)
        xm_seg = jnp.pad(x_mark_enc[:, st:en, :], ((0, 0), (0, Lp - sl), (0, 0)))
        group_slabs = []
        for idx in packed['group_channel_idx']:
            gx = x_enc[:, st:en, :][:, :, idx]                        # (B, sl, cg)

            def padc(a):
                return jnp.pad(a, ((0, 0), (0, Lp - sl), (0, cg_max - a.shape[-1])))

            slab = jnp.concatenate(
                [padc(jnp.roll(gx, 1, axis=1)), padc(gx),
                 padc(jnp.roll(gx, -1, axis=1)), xm_seg], axis=-1)    # (B, Lp, 3cg+M)
            group_slabs.append(slab.reshape(N, 3 * cg_max + M))
        emb_slabs.append(jnp.stack(group_slabs, axis=0))
    emb_in_l = jnp.stack(emb_slabs, axis=0).astype(jnp.bfloat16)      # (S, G, N, 3cg+M)
    seg_lens = jnp.asarray(seg_lens, dtype=jnp.int32)
    pos_bl = jnp.tile(pos_table[:Lp], (B, 1))                         # (N, D)

    proj = run_local_blocks(packed, seg_lens, emb_in_l, pos_bl, n_heads, B, Lp, npad)
    proj = proj[:, :, 0, :N].reshape(S, G, B, Lp)                     # strip lane padding

    chan_group = packed['chan_group']
    seg_outputs = []
    for i in range(S):
        sl = split_points[i + 1] - split_points[i]
        seg = jnp.transpose(proj[i, :, :, :sl], (1, 2, 0))            # (B, sl, G)
        seg_outputs.append(jnp.take(seg, chan_group, axis=-1))        # (B, sl, enc_in)
    final_out = jnp.concatenate(seg_outputs, axis=1)                  # (B, L, enc_in)
    return final_out[:, -pred_len:, :]


# --------------------------------------------------------------------------- main
if __name__ == "__main__":
    B, L, C, D, H, M = 2, 8, 4, 32, 4, 4
    d_ff = 64
    pred_len = 4
    direction = [0, 0, 1, 1]          # two channel groups of two channels each

    key = jax.random.PRNGKey(0)
    k1, k2, kp = jax.random.split(key, 3)
    x_enc = jax.random.normal(k1, (B, L, C), dtype=jnp.float32)
    x_mark_enc = jax.random.normal(k2, (B, L, M), dtype=jnp.float32)
    x_dec = jnp.zeros((B, pred_len, C), dtype=jnp.float32)        # unused by forecast
    x_mark_dec = jnp.zeros((B, pred_len, M), dtype=jnp.float32)   # unused by forecast

    params = init_params(kp, C, D, d_ff, M, direction)
    packed = pack_params(params, direction)
    pos_table = make_positional_table(64, D)

    out = model_forward(packed, x_enc, x_mark_enc, x_dec, x_mark_dec,
                        pred_len=pred_len, n_heads=H, pos_table=pos_table)
    out = jax.block_until_ready(out)
    assert out.shape == (B, pred_len, C), out.shape
    assert bool(jnp.all(jnp.isfinite(out)))
    print("KERNEL_OK")
</pallas_src>

<mosaic_0001>
module attributes {stable_mosaic.version = 11 : i64} {
  func.func @_global_diag_kernel(%arg0: i32, %arg1: memref<1x8x16xbf16, #tpu.memory_space<vmem>>, %arg2: memref<8x32xf32, #tpu.memory_space<vmem>>, %arg3: memref<16x32xbf16, #tpu.memory_space<vmem>>, %arg4: memref<32x64xbf16, #tpu.memory_space<vmem>>, %arg5: memref<1x64xf32, #tpu.memory_space<vmem>>, %arg6: memref<8x1xf32, #tpu.memory_space<vmem>>) attributes {dimension_semantics = [#tpu.dimension_semantics<arbitrary>], iteration_bounds = array<i64: 2>, scalar_prefetch = 0 : i64, scratch_operands = 0 : i64, tpu.core_type = #tpu.core_type<tc>, window_params = [{transform_indices = @transform_0, window_bounds = array<i64: 1, 8, 16>}, {pipeline_mode = #tpu.pipeline_mode<synchronous>, transform_indices = @transform_1, window_bounds = array<i64: 8, 32>}, {pipeline_mode = #tpu.pipeline_mode<synchronous>, transform_indices = @transform_2, window_bounds = array<i64: 16, 32>}, {pipeline_mode = #tpu.pipeline_mode<synchronous>, transform_indices = @transform_3, window_bounds = array<i64: 32, 64>}, {pipeline_mode = #tpu.pipeline_mode<synchronous>, transform_indices = @transform_4, window_bounds = array<i64: 1, 64>}, {pipeline_mode = #tpu.pipeline_mode<synchronous>, transform_indices = @transform_5, window_bounds = array<i64: 8, 1>}]} {
    %c0_i32 = arith.constant 0 : i32
    %0 = arith.cmpi eq, %arg0, %c0_i32 : i32
    %1 = arith.extui %0 : i1 to i32
    %c0_i32_0 = arith.constant 0 : i32
    %2 = arith.cmpi ne, %1, %c0_i32_0 : i32
    scf.if %2 {
      %cst_42 = arith.constant 0.000000e+00 : f32
      %116 = vector.broadcast %cst_42 : f32 to vector<8x1xf32>
      %c0_43 = arith.constant 0 : index
      %c0_44 = arith.constant 0 : index
      %117 = vector.load %arg6[%c0_43, %c0_44] : memref<8x1xf32, #tpu.memory_space<vmem>>, vector<8x1xf32>
      tpu.vector_store %arg6[%c0_43, %c0_44], %116 {strides = array<i32>} : memref<8x1xf32, #tpu.memory_space<vmem>>, vector<8x1xf32>,
    } else {
    }
    %c0 = arith.constant 0 : index
    %c0_1 = arith.constant 0 : index
    %c0_2 = arith.constant 0 : index
    %3 = vector.load %arg1[%c0, %c0_1, %c0_2] : memref<1x8x16xbf16, #tpu.memory_space<vmem>>, vector<1x8x16xbf16>
    %4 = vector.shape_cast %3 : vector<1x8x16xbf16> to vector<8x16xbf16>
    %c0_3 = arith.constant 0 : index
    %c0_4 = arith.constant 0 : index
    %5 = vector.load %arg3[%c0_3, %c0_4] : memref<16x32xbf16, #tpu.memory_space<vmem>>, vector<16x32xbf16>
    %cst = arith.constant dense<0.000000e+00> : vector<8x32xf32>
    %6 = tpu.matmul %4, %5, %cst {dimension_numbers = #tpu.dot_dimension_numbers<[1], [0], [0], [1], [0, 0, 1, 1], [], []>} : vector<8x16xbf16>, vector<16x32xbf16>, vector<8x32xf32> -> vector<8x32xf32>
    %c0_5 = arith.constant 0 : index
    %c0_6 = arith.constant 0 : index
    %7 = vector.load %arg2[%c0_5, %c0_6] : memref<8x32xf32, #tpu.memory_space<vmem>>, vector<8x32xf32>
    %8 = arith.addf %6, %7 : vector<8x32xf32>
    %9 = arith.truncf %8 : vector<8x32xf32> to vector<8x32xbf16>
    %c0_7 = arith.constant 0 : index
    %c0_8 = arith.constant 0 : index
    %10 = vector.load %arg4[%c0_7, %c0_8] : memref<32x64xbf16, #tpu.memory_space<vmem>>, vector<32x64xbf16>
    %cst_9 = arith.constant dense<0.000000e+00> : vector<8x64xf32>
    %11 = tpu.matmul %9, %10, %cst_9 {dimension_numbers = #tpu.dot_dimension_numbers<[1], [0], [0], [1], [0, 0, 1, 1], [], []>} : vector<8x32xbf16>, vector<32x64xbf16>, vector<8x64xf32> -> vector<8x64xf32>
    %c0_10 = arith.constant 0 : index
    %c0_11 = arith.constant 0 : index
    %12 = vector.load %arg5[%c0_10, %c0_11] : memref<1x64xf32, #tpu.memory_space<vmem>>, vector<1x64xf32>
    %13 = vector.broadcast %12 : vector<1x64xf32> to vector<8x64xf32>
    %14 = arith.addf %11, %13 : vector<8x64xf32>
    %15 = vector.extract_strided_slice %14 {offsets = [0, 0], sizes = [8, 32], strides = [1, 1]} : vector<8x64xf32> to vector<8x32xf32>
    %16 = vector.extract_strided_slice %14 {offsets = [0, 32], sizes = [8, 32], strides = [1, 1]} : vector<8x64xf32> to vector<8x32xf32>
    %cst_12 = arith.constant 0.000000e+00 : f32
    %17 = vector.broadcast %cst_12 : f32 to vector<8x1xf32>
    %18 = vector.extract_strided_slice %15 {offsets = [0, 0], sizes = [8, 8], strides = [1, 1]} : vector<8x32xf32> to vector<8x8xf32>
    %19 = vector.extract_strided_slice %16 {offsets = [0, 0], sizes = [8, 8], strides = [1, 1]} : vector<8x32xf32> to vector<8x8xf32>
    %20 = arith.truncf %18 : vector<8x8xf32> to vector<8x8xbf16>
    %21 = arith.truncf %19 : vector<8x8xf32> to vector<8x8xbf16>
    %cst_13 = arith.constant dense<0.000000e+00> : vector<8x8xf32>
    %22 = tpu.matmul %20, %21, %cst_13 {dimension_numbers = #tpu.dot_dimension_numbers<[1], [1], [0], [0], [0, 0, 1, 0], [], []>} : vector<8x8xbf16>, vector<8x8xbf16>, vector<8x8xf32> -> vector<8x8xf32>
    %cst_14 = arith.constant 0.353553385 : f32
    %23 = vector.broadcast %cst_14 : f32 to vector<8x8xf32>
    %24 = arith.mulf %22, %23 : vector<8x8xf32>
    %cst_15 = arith.constant dense<0xFF800000> : vector<8xf32>
    %25 = vector.multi_reduction <maximumf>, %24, %cst_15 [1] : vector<8x8xf32> to vector<8xf32>
    %26 = vector.shape_cast %25 : vector<8xf32> to vector<8x1xf32>
    %27 = vector.broadcast %26 : vector<8x1xf32> to vector<8x8xf32>
    %28 = arith.subf %24, %27 : vector<8x8xf32>
    %29 = math.exp %28 : vector<8x8xf32>
    %cst_16 = arith.constant dense<0.000000e+00> : vector<8xf32>
    %30 = vector.multi_reduction <add>, %29, %cst_16 [1] : vector<8x8xf32> to vector<8xf32>
    %31 = vector.shape_cast %30 : vector<8xf32> to vector<8x1xf32>
    %32 = arith.mulf %18, %19 : vector<8x8xf32>
    %cst_17 = arith.constant dense<0.000000e+00> : vector<8xf32>
    %33 = vector.multi_reduction <add>, %32, %cst_17 [1] : vector<8x8xf32> to vector<8xf32>
    %34 = vector.shape_cast %33 : vector<8xf32> to vector<8x1xf32>
    %cst_18 = arith.constant 0.353553385 : f32
    %35 = vector.broadcast %cst_18 : f32 to vector<8x1xf32>
    %36 = arith.mulf %34, %35 : vector<8x1xf32>
    %37 = arith.subf %36, %26 : vector<8x1xf32>
    %38 = math.exp %37 : vector<8x1xf32>
    %39 = arith.divf %38, %31 : vector<8x1xf32>
    %40 = arith.addf %17, %39 : vector<8x1xf32>
    %41 = vector.extract_strided_slice %15 {offsets = [0, 8], sizes = [8, 8], strides = [1, 1]} : vector<8x32xf32> to vector<8x8xf32>
    %42 = vector.extract_strided_slice %16 {offsets = [0, 8], sizes = [8, 8], strides = [1, 1]} : vector<8x32xf32> to vector<8x8xf32>
    %43 = arith.truncf %41 : vector<8x8xf32> to vector<8x8xbf16>
    %44 = arith.truncf %42 : vector<8x8xf32> to vector<8x8xbf16>
    %cst_19 = arith.constant dense<0.000000e+00> : vector<8x8xf32>
    %45 = tpu.matmul %43, %44, %cst_19 {dimension_numbers = #tpu.dot_dimension_numbers<[1], [1], [0], [0], [0, 0, 1, 0], [], []>} : vector<8x8xbf16>, vector<8x8xbf16>, vector<8x8xf32> -> vector<8x8xf32>
    %cst_20 = arith.constant 0.353553385 : f32
    %46 = vector.broadcast %cst_20 : f32 to vector<8x8xf32>
    %47 = arith.mulf %45, %46 : vector<8x8xf32>
    %cst_21 = arith.constant dense<0xFF800000> : vector<8xf32>
    %48 = vector.multi_reduction <maximumf>, %47, %cst_21 [1] : vector<8x8xf32> to vector<8xf32>
    %49 = vector.shape_cast %48 : vector<8xf32> to vector<8x1xf32>
    %50 = vector.broadcast %49 : vector<8x1xf32> to vector<8x8xf32>
    %51 = arith.subf %47, %50 : vector<8x8xf32>
    %52 = math.exp %51 : vector<8x8xf32>
    %cst_22 = arith.constant dense<0.000000e+00> : vector<8xf32>
    %53 = vector.multi_reduction <add>, %52, %cst_22 [1] : vector<8x8xf32> to vector<8xf32>
    %54 = vector.shape_cast %53 : vector<8xf32> to vector<8x1xf32>
    %55 = arith.mulf %41, %42 : vector<8x8xf32>
    %cst_23 = arith.constant dense<0.000000e+00> : vector<8xf32>
    %56 = vector.multi_reduction <add>, %55, %cst_23 [1] : vector<8x8xf32> to vector<8xf32>
    %57 = vector.shape_cast %56 : vector<8xf32> to vector<8x1xf32>
    %cst_24 = arith.constant 0.353553385 : f32
    %58 = vector.broadcast %cst_24 : f32 to vector<8x1xf32>
    %59 = arith.mulf %57, %58 : vector<8x1xf32>
    %60 = arith.subf %59, %49 : vector<8x1xf32>
    %61 = math.exp %60 : vector<8x1xf32>
    %62 = arith.divf %61, %54 : vector<8x1xf32>
    %63 = arith.addf %40, %62 : vector<8x1xf32>
    %64 = vector.extract_strided_slice %15 {offsets = [0, 16], sizes = [8, 8], strides = [1, 1]} : vector<8x32xf32> to vector<8x8xf32>
    %65 = vector.extract_strided_slice %16 {offsets = [0, 16], sizes = [8, 8], strides = [1, 1]} : vector<8x32xf32> to vector<8x8xf32>
    %66 = arith.truncf %64 : vector<8x8xf32> to vector<8x8xbf16>
    %67 = arith.truncf %65 : vector<8x8xf32> to vector<8x8xbf16>
    %cst_25 = arith.constant dense<0.000000e+00> : vector<8x8xf32>
    %68 = tpu.matmul %66, %67, %cst_25 {dimension_numbers = #tpu.dot_dimension_numbers<[1], [1], [0], [0], [0, 0, 1, 0], [], []>} : vector<8x8xbf16>, vector<8x8xbf16>, vector<8x8xf32> -> vector<8x8xf32>
    %cst_26 = arith.constant 0.353553385 : f32
    %69 = vector.broadcast %cst_26 : f32 to vector<8x8xf32>
    %70 = arith.mulf %68, %69 : vector<8x8xf32>
    %cst_27 = arith.constant dense<0xFF800000> : vector<8xf32>
    %71 = vector.multi_reduction <maximumf>, %70, %cst_27 [1] : vector<8x8xf32> to vector<8xf32>
    %72 = vector.shape_cast %71 : vector<8xf32> to vector<8x1xf32>
    %73 = vector.broadcast %72 : vector<8x1xf32> to vector<8x8xf32>
    %74 = arith.subf %70, %73 : vector<8x8xf32>
    %75 = math.exp %74 : vector<8x8xf32>
    %cst_28 = arith.constant dense<0.000000e+00> : vector<8xf32>
    %76 = vector.multi_reduction <add>, %75, %cst_28 [1] : vector<8x8xf32> to vector<8xf32>
    %77 = vector.shape_cast %76 : vector<8xf32> to vector<8x1xf32>
    %78 = arith.mulf %64, %65 : vector<8x8xf32>
    %cst_29 = arith.constant dense<0.000000e+00> : vector<8xf32>
    %79 = vector.multi_reduction <add>, %78, %cst_29 [1] : vector<8x8xf32> to vector<8xf32>
    %80 = vector.shape_cast %79 : vector<8xf32> to vector<8x1xf32>
    %cst_30 = arith.constant 0.353553385 : f32
    %81 = vector.broadcast %cst_30 : f32 to vector<8x1xf32>
    %82 = arith.mulf %80, %81 : vector<8x1xf32>
    %83 = arith.subf %82, %72 : vector<8x1xf32>
    %84 = math.exp %83 : vector<8x1xf32>
    %85 = arith.divf %84, %77 : vector<8x1xf32>
    %86 = arith.addf %63, %85 : vector<8x1xf32>
    %87 = vector.extract_strided_slice %15 {offsets = [0, 24], sizes = [8, 8], strides = [1, 1]} : vector<8x32xf32> to vector<8x8xf32>
    %88 = vector.extract_strided_slice %16 {offsets = [0, 24], sizes = [8, 8], strides = [1, 1]} : vector<8x32xf32> to vector<8x8xf32>
    %89 = arith.truncf %87 : vector<8x8xf32> to vector<8x8xbf16>
    %90 = arith.truncf %88 : vector<8x8xf32> to vector<8x8xbf16>
    %cst_31 = arith.constant dense<0.000000e+00> : vector<8x8xf32>
    %91 = tpu.matmul %89, %90, %cst_31 {dimension_numbers = #tpu.dot_dimension_numbers<[1], [1], [0], [0], [0, 0, 1, 0], [], []>} : vector<8x8xbf16>, vector<8x8xbf16>, vector<8x8xf32> -> vector<8x8xf32>
    %cst_32 = arith.constant 0.353553385 : f32
    %92 = vector.broadcast %cst_32 : f32 to vector<8x8xf32>
    %93 = arith.mulf %91, %92 : vector<8x8xf32>
    %cst_33 = arith.constant dense<0xFF800000> : vector<8xf32>
    %94 = vector.multi_reduction <maximumf>, %93, %cst_33 [1] : vector<8x8xf32> to vector<8xf32>
    %95 = vector.shape_cast %94 : vector<8xf32> to vector<8x1xf32>
    %96 = vector.broadcast %95 : vector<8x1xf32> to vector<8x8xf32>
    %97 = arith.subf %93, %96 : vector<8x8xf32>
    %98 = math.exp %97 : vector<8x8xf32>
    %cst_34 = arith.constant dense<0.000000e+00> : vector<8xf32>
    %99 = vector.multi_reduction <add>, %98, %cst_34 [1] : vector<8x8xf32> to vector<8xf32>
    %100 = vector.shape_cast %99 : vector<8xf32> to vector<8x1xf32>
    %101 = arith.mulf %87, %88 : vector<8x8xf32>
    %cst_35 = arith.constant dense<0.000000e+00> : vector<8xf32>
    %102 = vector.multi_reduction <add>, %101, %cst_35 [1] : vector<8x8xf32> to vector<8xf32>
    %103 = vector.shape_cast %102 : vector<8xf32> to vector<8x1xf32>
    %cst_36 = arith.constant 0.353553385 : f32
    %104 = vector.broadcast %cst_36 : f32 to vector<8x1xf32>
    %105 = arith.mulf %103, %104 : vector<8x1xf32>
    %106 = arith.subf %105, %95 : vector<8x1xf32>
    %107 = math.exp %106 : vector<8x1xf32>
    %108 = arith.divf %107, %100 : vector<8x1xf32>
    %109 = arith.addf %86, %108 : vector<8x1xf32>
    %c0_37 = arith.constant 0 : index
    %c0_38 = arith.constant 0 : index
    %110 = vector.load %arg6[%c0_37, %c0_38] : memref<8x1xf32, #tpu.memory_space<vmem>>, vector<8x1xf32>
    %111 = arith.addf %110, %109 : vector<8x1xf32>
    %c0_39 = arith.constant 0 : index
    %c0_40 = arith.constant 0 : index
    %112 = vector.load %arg6[%c0_39, %c0_40] : memref<8x1xf32, #tpu.memory_space<vmem>>, vector<8x1xf32>
    tpu.vector_store %arg6[%c0_39, %c0_40], %111 {strides = array<i32>} : memref<8x1xf32, #tpu.memory_space<vmem>>, vector<8x1xf32>,
    %c1_i32 = arith.constant 1 : i32
    %113 = arith.cmpi eq, %arg0, %c1_i32 : i32
    %114 = arith.extui %113 : i1 to i32
    %c0_i32_41 = arith.constant 0 : i32
    %115 = arith.cmpi ne, %114, %c0_i32_41 : i32
    scf.if %115 {
      %c0_42 = arith.constant 0 : index
      %c0_43 = arith.constant 0 : index
      %116 = vector.load %arg6[%c0_42, %c0_43] : memref<8x1xf32, #tpu.memory_space<vmem>>, vector<8x1xf32>
      %cst_44 = arith.constant 1.250000e-01 : f32
      %117 = vector.broadcast %cst_44 : f32 to vector<8x1xf32>
      %118 = arith.mulf %116, %117 : vector<8x1xf32>
      %c0_45 = arith.constant 0 : index
      %c0_46 = arith.constant 0 : index
      %119 = vector.load %arg6[%c0_45, %c0_46] : memref<8x1xf32, #tpu.memory_space<vmem>>, vector<8x1xf32>
      tpu.vector_store %arg6[%c0_45, %c0_46], %118 {strides = array<i32>} : memref<8x1xf32, #tpu.memory_space<vmem>>, vector<8x1xf32>,
    } else {
    }
    return
  }
  func.func @transform_0(%arg0: i32) -> (i32, i32, i32) {
    %c0_i32 = arith.constant 0 : i32
    %c0_i32_0 = arith.constant 0 : i32
    %c0_i32_1 = arith.constant 0 : i32
    return %arg0, %c0_i32, %c0_i32_0 : i32, i32, i32
  }
  func.func @transform_1(%arg0: i32) -> (i32, i32) {
    %c0_i32 = arith.constant 0 : i32
    %c0_i32_0 = arith.constant 0 : i32
    %c0_i32_1 = arith.constant 0 : i32
    return %c0_i32, %c0_i32_0 : i32, i32
  }
  func.func @transform_2(%arg0: i32) -> (i32, i32) {
    %c0_i32 = arith.constant 0 : i32
    %c0_i32_0 = arith.constant 0 : i32
    %c0_i32_1 = arith.constant 0 : i32
    return %c0_i32, %c0_i32_0 : i32, i32
  }
  func.func @transform_3(%arg0: i32) -> (i32, i32) {
    %c0_i32 = arith.constant 0 : i32
    %c0_i32_0 = arith.constant 0 : i32
    %c0_i32_1 = arith.constant 0 : i32
    return %c0_i32, %c0_i32_0 : i32, i32
  }
  func.func @transform_4(%arg0: i32) -> (i32, i32) {
    %c0_i32 = arith.constant 0 : i32
    %c0_i32_0 = arith.constant 0 : i32
    %c0_i32_1 = arith.constant 0 : i32
    return %c0_i32, %c0_i32_0 : i32, i32
  }
  func.func @transform_5(%arg0: i32) -> (i32, i32) {
    %c0_i32 = arith.constant 0 : i32
    %c0_i32_0 = arith.constant 0 : i32
    %c0_i32_1 = arith.constant 0 : i32
    return %c0_i32, %c0_i32_0 : i32, i32
  }
}

</mosaic_0001>

<bundles_post_ra>
// kernel: tpu_custom_call.1
= control target key start
LH: loop header
LB: loop body
LE: loop exit
PB: predicated region body
PF: predicated region fallthrough
CT: control target
= control target key end

     0   :  { %10 = vsyncpa [#allocation3], 0  ;;  %s1236_s0 = inlined_call_operand.hbm [shape: bf16[2,8,16], index: 0, kind: input, shape index: {}]   ;;  %s1237_s1 = inlined_call_operand.hbm [shape: f32[8,32], index: 1, kind: input, shape index: {}]   ;;  %s1238_s2 = inlined_call_operand.hbm [shape: bf16[16,32], index: 2, kind: input, shape index: {}]   ;;  %s1239_s3 = inlined_call_operand.hbm [shape: bf16[32,64], index: 3, kind: input, shape index: {}]   ;;  %s1240_s4 = inlined_call_operand.vmem [shape: f32[1,64], index: 4, kind: input, shape index: {}]   ;;  %s1241_s5 = inlined_call_operand.vmem [shape: f32[8,1], index: 5, kind: output, shape index: {}]  }
   0x1   :  { %12 = vsyncpa [#allocation3 + $0x1], 0 }
   0x2   :  { %13 = vsyncpa [#allocation5], 0 }
   0x3   :  { %14 = vsyncpa [#allocation8], 0  ;;  %s1018_s18 = smov 0   ;;  %s1020_s19 = smov 0  }
   0x4   :  { %s1022_s20 = smov 0   ;;  %s1024_s21 = smov 0  }
   0x5 LB: > { %s1037_s22 = sadd.s32 4294967295, %s973_s21   ;;  %p40_p0 = scmp.ne.s32.totalorder %s965_s19, %s961_s18  ;;  %s973_s21 = sphi %s1024_s21, %s1256_s21   ;;  %s969_s20 = sphi %s1022_s20, %s1255_s20   ;;  %s965_s19 = sphi %s1020_s19, %s1254_s19   ;;  %s961_s18 = sphi %s1018_s18, %s1253_s18  }
   0x6   : > { %p41_p1 = scmp.eq.s32.totalorder %s1037_s22, 0  ;;  %p669_p2 = scmp.ge.s32.totalorder %s973_s21, 1 }
   0x7   : > { %p156_p3 = scmp.lt.s32.totalorder %s973_s21, 3  ;;  %p670_p4 = scmp.ne.s32.totalorder %s1037_s22, 0 }
   0x8   : > { %p1046_p5 = por %p41_p1, %p40_p0  ;;  %s168_s26 = sshll.u32 %s1237_s1, 4  ;;  %s169_s26 = int_to_ptr.hbm [resolvable:$true] %s168_s26 }
   0x9   : > { %p1053_p6 = pnand %p669_p2, %p156_p3  ;;  %s975_s28 = smov [#allocation4]  }
   0xa   : > { %s170_s29 = sshll.u32 %s975_s28, 4  ;;  %s179_s7 = sshll.u32 %s1238_s2, 4  ;;  %s171_s29 = int_to_ptr.vmem [resolvable:$true] %s170_s29  ;;  %s180_s7 = int_to_ptr.hbm [resolvable:$true] %s179_s7 }
   0xb   : > { %p720_p7 = pneg %p1053_p6  ;;  %s976_s9 = smov [#allocation6]  }
   0xc   : > { %s181_s10 = sshll.u32 %s976_s9, 4  ;;  %s977_s11 = smov 64   ;;  %s182_s10 = int_to_ptr.vmem [resolvable:$true] %s181_s10 }
   0xd   : > { %p1064_p8 = pnand %p720_p7, %p41_p1  ;;  %s978_s12 = smov 4  }
   0xe   : > { %s193_s15 = sshll.u32 %s1239_s3, 4  ;;  %s979_s16 = smov [#allocation7]   ;;  %s194_s15 = int_to_ptr.hbm [resolvable:$true] %s193_s15 }
   0xf   : > { %723 = dma.hbm_to_vmem [thread:$0]  (!%p1064_p8), %s169_s26, 128, %s171_s29, [#allocation5]  }
  0x10   : > { %726 = dma.hbm_to_vmem [thread:$0]  (!%p1064_p8), %s180_s7, 128, %s182_s10, [#allocation5], %s977_s11, %s977_s11, %s978_s12  }
  0x11   : > { %s195_s17 = sshll.u32 %s979_s16, 4  ;;  %s1078_s18 = sadd.s32 1, %s973_s21   ;;  %s196_s17 = int_to_ptr.vmem [resolvable:$true] %s195_s17 }
  0x12   : > { %729 = dma.hbm_to_vmem [thread:$0]  (!%p1064_p8), %s194_s15, 256, %s196_s17, [#allocation8], %s977_s11, %s977_s11, %s978_s12  }
  0x13   : > { %s24_s24 = ssub.s32 %s973_s21, %s1078_s18  ;;  %s27_s25 = sadd.s32 1, %s969_s20 }
  0x14   : > { %p25_p9 = scmp.eq.s32.totalorder %s24_s24, 0  ;;  %p34_p10 = scmp.ne.s32.totalorder %s969_s20, %s965_s19 }
  0x15   : > { %p35_p11 = scmp.eq.s32.totalorder %s973_s21, 0  ;;  %p737_p12 = scmp.lt.s32.totalorder %s973_s21, 2 }
  0x16   : > { %s1088_s26 = scalar_select %p25_p9, %s969_s20, %s27_s25  }
  0x17   : > { %p36_p13 = por %p35_p11, %p34_p10  ;;  %s212_s28 = sand.u32 1, %s969_s20  }
  0x18   : > { %s674_s29 = sshll.u32 %s212_s28, 2  ;;  %s675_s30 = sshll.u32 %s973_s21, 2 }
  0x19   : > { %s220_s8 = scalar_lea.hbm %s1236_s0, %s675_s30  ;;  %s216_s9 = scalar_lea.vmem [#allocation2], %s674_s29 }
  0x1a   : > { %s224_s10 = sshll.u32 %s216_s9, 4  ;;  %s222_s11 = sshll.u32 %s220_s8, 4  ;;  %s225_s10 = int_to_ptr.vmem [resolvable:$true] %s224_s10  ;;  %s223_s11 = int_to_ptr.hbm [resolvable:$true] %s222_s11 }
  0x1b   : > { %p1095_p0 = pnand %p737_p12, %p36_p13  ;;  %s213_s13 = scalar_lea.sflag [#allocation3], %s212_s28 }
  0x1c   : > { %s901_s14 = sshra.s32 %s223_s11, 4  ;;  %s908_s17 = scalar_lea.hbm %s1236_s0, 8  ;;  %s902_s14 = int_to_ptr.hbm [resolvable:$true] %s901_s14 }
  0x1d   : > { %s903_s15 = scalar_lea.hbm %s902_s14, 4  ;;  %p905_p3 = pneg %p1095_p0 }
  0x1e   : > { %p904_p2 = scmp.ne.s32.totalorder %s902_s14, %s903_s15  ;;  %p909_p9 = scmp.lt.s32.totalorder %s902_s14, %s1236_s0 }
  0x1f   : > { %p910_p10 = scmp.lt.s32.totalorder %s908_s17, %s903_s15 }
  0x20   : > { %p906_p7 = pnand %p905_p3, %p904_p2 }
  0x21   : > { %p911_p11 = por %p910_p10, %p909_p9 }
  0x22   : > { %p907_p8 = pneg %p906_p7 }
  0x24   : > { %p912_p12 = pnand %p911_p11, %p907_p8 }
  0x26   : > { %915 = shalt.err (!%p912_p12)
}
  0x27   : > { %733 = dma.hbm_to_vmem [thread:$0]  (!%p1095_p0), %s223_s11, 64, %s225_s10, %s213_s13  }
  0x28   : > { %233 = sbr.rel (%p1053_p6) target bundleno = 883 (0x373), region = 40  ;;  %s235_s28 = sand.u32 (!%p1053_p6), 1, %s965_s19  }
  0x29   : > { %s677_s29 = sshll.u32 (!%p1053_p6), %s235_s28, 2  ;;  %s236_s30 = scalar_lea.sflag (!%p1053_p6), [#allocation3], %s235_s28 }
  0x2a   : > { %s239_s6 = scalar_lea.vmem (!%p1053_p6), [#allocation2], %s677_s29 }
  0x2d   : > { %948 = dma.done.wait (%p1046_p5), %s236_s30, 64  }
  0x2e   : > { %950 = vsyncadd (%p1046_p5), %s236_s30, 4294967232 }
  0x2f   : > { %952 = dma.done.wait (%p41_p1), [#allocation5], 256  }
  0x30   : > { %954 = vsyncadd (%p41_p1), [#allocation5], 4294967040 }
  0x31   : > { %956 = dma.done.wait (%p41_p1), [#allocation8], 256  }
  0x32   : > { %958 = vsyncadd (%p41_p1), [#allocation8], 4294967040  ;;  %281 = sbr.rel (%p670_p4) target bundleno = 57 (0x39), region = 60 }
  0x37   : > { %vm282_vm0 = vcmask 7168   ;;  %v980_v0 = vmov 0.0  }
  0x38   : > { %283 = vst.msk [vmem:[%s1241_s5] sm:$0xff] %vm282_vm0, %v980_v0 }
  0x39 PF: > { %v703_v1 = vld [vmem:[#allocation6] sm:$0xff]  ;;  %v705_v2 = vld [vmem:[#allocation7 + $0x8] sm:$0xff]  ;;  %vm294_vm1 = vcmask 130048   ;;  %v704_v4 = vld [vmem:[#allocation7] sm:$0xff]  ;;  %vm332_vm2 = vcmask 261120   ;;  %s981_s9 = smov 72  }
  0x3a   : > { %305 = vmatpush.bf16.msra.mxu0 %v703_v1  ;;  %v284_v3 = vld [vmem:[%s239_s6] sm:$0xf]  ;;  %342 = vmatpush.bf16.msra.mxu1 %v705_v2  ;;  %v287_v5 = vld [vmem:[#allocation4] sm:$0xff]  ;;  %s982_s10 = smov 120   ;;  %s983_s11 = smov 96   ;;  %vm353_vm3 = vcmask 64512  }
  0x3b   : > { %v786_v10 = vld [vmem:[%s1240_s4] ss:$0 sm:$0xff]  ;;  %s984_s12 = smov 112   ;;  %s985_s13 = smov 80  }
  0x3c   : > { %s986_s14 = smov 88   ;;  %s987_s15 = smov 104  }
  0x3d   : > { %686 = vmatmul.msk.bf16.vlgmr.msra.gmra.mxu0 %vm294_vm1, %v284_v3  ;;  %p700_p1 = scmp.ne.s32.totalorder %s1037_s22, 1 }
  0x3e   : > { %343 = vmatpush.bf16.msra.mxu1 %v704_v4 }
  0xba   : > { %v307_v6 = vpop.f32.mrf.mxu0 }
  0xbb   : > { %v308_v7 = vadd.f32 %v307_v6, %v287_v5 }
  0xbd   : > { %v311_v8 = vpack.c.bf16 %v308_v7, %v308_v7 }
  0xbf   : > { %695 = vmatmul.msk.bf16.vlgmr.msra.gmra.mxu1 %vm332_vm2, %v311_v8 }
  0xc2   : > { %v309_v9 = vpop.f32.mrf.mxu0 }
 0x13c   : > { %v345_v11 = vpop.f32.mrf.mxu1 }
 0x13d   : > { %v346_v12 = vadd.f32 %v786_v10, %v345_v11 }
 0x13f   : > { %v349_v13 = vpack.c.bf16 %v346_v12, %v346_v12 }
 0x141   : > { %532 = vrot.lane.b32.xlu2 %v349_v13, %s981_s9  ;;  %411 = vrot.lane.b32.xlu1 %v349_v13, %s982_s10 }
 0x142   : > { %351 = vrot.lane.b32.xlu0 %v349_v13, %s983_s11 }
 0x144   : > { %v347_v14 = vpop.f32.mrf.mxu1 }
 0x149   : > { %471 = vrot.lane.b32.xlu2 %v349_v13, %s984_s12  ;;  %473 = vrot.lane.b32.xlu1 %v349_v13, %s985_s13 }
 0x14a   : > { %413 = vrot.lane.b32.xlu0 %v349_v13, %s986_s14 }
 0x152   : > { %530 = vrot.lane.b32.xlu0 %v349_v13, %s987_s15 }
 0x15a   : > { %384 = vrot.lane.b32.xlu0 %v346_v12, %s983_s11 }
 0x19b   : > { %v533_v15 = vpop.permute.xlu2 %532 }
 0x19c   : > { %v538_v16 = vsel %vm353_vm3, %v533_v15, 0 }
 0x19d   : > { %547 = vmatpush.bf16.xpose.msrb.mxu1 %v538_v16 }
 0x1a3   : > { %v472_v24 = vpop.permute.xlu2 %471 }
 0x1b3   : > { %v412_v17 = vpop.permute.xlu1 %411 }
 0x1b4   : > { %v352_v18 = vpop.permute.xlu0 %351 }
 0x1b5   : > { %v358_v19 = vsel %vm353_vm3, %v352_v18, 0 }
 0x1b6   : > { %367 = vmatpush.bf16.xpose.msra.mxu2 %v358_v19 }
 0x1bb   : > { %v474_v20 = vpop.permute.xlu1 %473 }
 0x1bc   : > { %v414_v21 = vpop.permute.xlu0 %413  ;;  %v479_v22 = vsel %vm353_vm3, %v474_v20, 0 }
 0x1bd   : > { %696 = vmatmul.msk.bf16.vlgmr.msra.gmra.mxu2 %vm353_vm3, %v349_v13  ;;  %v419_v23 = vsel %vm353_vm3, %v414_v21, 0  ;;  %488 = vmatpush.bf16.xpose.msrb.mxu0 %v479_v22 }
 0x1be   : > { %428 = vmatpush.bf16.xpose.msra.mxu3 %v419_v23 }
 0x1c4   : > { %v531_v25 = vpop.permute.xlu0 %530  ;;  %698 = vmatmul.msk.bf16.vlgmr.msrb.gmra.mxu0 %vm353_vm3, %v472_v24 }
 0x1c5   : > { %697 = vmatmul.msk.bf16.vlgmr.msra.gmra.mxu3 %vm353_vm3, %v412_v17  ;;  %699 = vmatmul.msk.bf16.vlgmr.msrb.gmra.mxu1 %vm353_vm3, %v531_v25 }
 0x1cc   : > { %v385_v26 = vpop.permute.xlu0 %384 }
 0x1cd   : > { %v387_v27 = vmul.f32 %v385_v26, %v346_v12 }
 0x1cf   : > { %v388_v28 = vsel %vm353_vm3, %v387_v27, 0.0 }
 0x1d0   : > { %389 = vadd.xlane.f32.xlu0 %v388_v28 }
 0x240   : > { %v369_v29 = vpop.f32.mrf.mxu2 }
 0x241   : > { %v373_v30 = vmul.f32 0.35355338, %v369_v29  ;;  %v490_v31 = vpop.f32.mrf.mxu0 }
 0x242   : > { %v549_v32 = vpop.f32.mrf.mxu1  ;;  %v494_v36 = vmul.f32 0.35355338, %v490_v31 }
 0x243   : > { %v553_v33 = vmul.f32 0.35355338, %v549_v32  ;;  %v374_v34 = vsel %vm353_vm3, %v373_v30, -inf  ;;  %v390_v46 = vpop.xlane.xlu0 %389 }
 0x244   : > { %375 = vmax.xlane.f32.xlu1 %v374_v34  ;;  %v495_v42 = vsel %vm353_vm3, %v494_v36, -inf  ;;  %v391_v11 = vmul.f32 0.35355338, %v390_v46 }
 0x245   : > { %v554_v35 = vsel %vm353_vm3, %v553_v33, -inf }
 0x246   : > { %555 = vmax.xlane.f32.xlu0 %v554_v35 }
 0x248   : > { %v371_v37 = vpop.f32.mrf.mxu2  ;;  %v430_v38 = vpop.f32.mrf.mxu3 }
 0x249   : > { %v434_v39 = vmul.f32 0.35355338, %v430_v38  ;;  %v492_v40 = vpop.f32.mrf.mxu0 }
 0x24a   : > { %v551_v41 = vpop.f32.mrf.mxu1 }
 0x24b   : > { %v435_v43 = vsel %vm353_vm3, %v434_v39, -inf }
 0x24c   : > { %496 = vmax.xlane.f32.xlu1 %v495_v42  ;;  %436 = vmax.xlane.f32.xlu2 %v435_v43 }
 0x250   : > { %v432_v44 = vpop.f32.mrf.mxu3 }
 0x25a   : > { %563 = vrot.lane.b32.xlu0 %v387_v27, %s987_s15 }
 0x264   : > { %445 = vrot.lane.b32.xlu2 %v387_v27, %s982_s10 }
 0x265   : > { %504 = vrot.lane.b32.xlu1 %v387_v27, %s984_s12 }
 0x2b7   : > { %v376_v45 = vpop.xlane.xlu1 %375 }
 0x2b8   : > { %v377_v47 = vsub.f32 %v373_v30, %v376_v45  ;;  %v392_v13 = vsub.f32 %v391_v11, %v376_v45 }
 0x2b9   : > { %v1154_v54 = vpop.xlane.xlu0 %555 }
 0x2ba   : > { %v378_v52 = vmul.f32 1.442695, %v377_v47  ;;  %v557_v55 = vsub.f32 %v553_v33, %v1154_v54  ;;  %v393_v18 = vmul.f32 1.442695, %v392_v13 }
 0x2bc   : > { %v558_v60 = vmul.f32 1.442695, %v557_v55 }
 0x2bf   : > { %v437_v48 = vpop.xlane.xlu2 %436  ;;  %v1151_v49 = vpop.xlane.xlu1 %496 }
 0x2c0   : > { %v438_v50 = vsub.f32 %v434_v39, %v437_v48  ;;  %v498_v53 = vsub.f32 %v494_v36, %v1151_v49 }
 0x2c2   : > { %v439_v51 = vmul.f32 1.442695, %v438_v50  ;;  %v499_v56 = vmul.f32 1.442695, %v498_v53 }
 0x2c4   : > { %787 = vpow2.f32 %v439_v51 }
 0x2c5   : > { %789 = vpow2.f32 %v378_v52 }
 0x2c6   : > { %791 = vpow2.f32 %v499_v56 }
 0x2c7   : > { %v446_v57 = vpop.permute.xlu2 %445  ;;  %793 = vpow2.f32 %v558_v60 }
 0x2c8   : > { %v448_v58 = vsel %vm353_vm3, %v446_v57, 0.0 }
 0x2c9   : > { %449 = vadd.xlane.f32.xlu2 %v448_v58 }
 0x2ca   : > { %v788_v59 = vpop.eup %787 }
 0x2cb   : > { %v441_v61 = vsel %vm353_vm3, %v788_v59, 0.0  ;;  %v790_v62 = vpop.eup %789 }
 0x2cc   : > { %442 = vadd.xlane.f32.xlu1 %v441_v61  ;;  %v380_v63 = vsel %vm353_vm3, %v790_v62, 0.0  ;;  %v792_v0 = vpop.eup %791  ;;  %v564_v6 = vpop.permute.xlu0 %563 }
 0x2cd   : > { %v501_v1 = vsel %vm353_vm3, %v792_v0, 0.0  ;;  %v794_v2 = vpop.eup %793  ;;  %v566_v7 = vsel %vm353_vm3, %v564_v6, 0.0 }
 0x2ce   : > { %v560_v5 = vsel %vm353_vm3, %v794_v2, 0.0 }
 0x2d1   : > { %381 = vadd.xlane.f32.xlu2 %v380_v63 }
 0x2d4   : > { %502 = vadd.xlane.f32.xlu1 %v501_v1 }
 0x2d7   : > { %v505_v3 = vpop.permute.xlu1 %504 }
 0x2d8   : > { %v507_v4 = vsel %vm353_vm3, %v505_v3, 0.0 }
 0x2d9   : > { %508 = vadd.xlane.f32.xlu0 %v507_v4  ;;  %561 = vadd.xlane.f32.xlu2 %v560_v5 }
 0x2e1   : > { %567 = vadd.xlane.f32.xlu2 %v566_v7 }
 0x33c   : > { %v450_v8 = vpop.xlane.xlu2 %449 }
 0x33d   : > { %v451_v14 = vmul.f32 0.35355338, %v450_v8 }
 0x33f   : > { %v1164_v9 = vpop.xlane.xlu1 %442  ;;  %v452_v19 = vsub.f32 %v451_v14, %v437_v48 }
 0x340   : > { %795 = vrcp.f32 %v1164_v9  ;;  %vm460_vm4 = vweird.f32 %v1164_v9  ;;  %v464_v31 = vand.u32 2147483647, %v1164_v9  ;;  %v466_v32 = vand.u32 2147483648, %v1164_v9 }
 0x341   : > { %v453_v27 = vmul.f32 1.442695, %v452_v19 }
 0x342   : > { %v467_v60 = vor.u32 1.1754944e-38, %v466_v32  ;;  %vm465_vm14 = vcmp.eq.f32.partialorder %v464_v31, 8.507059e+37 }
 0x344   : > { %v382_v10 = vpop.xlane.xlu2 %381 }
 0x345   : > { %797 = vrcp.f32 %v382_v10  ;;  %vm400_vm5 = vweird.f32 %v382_v10  ;;  %v404_v37 = vand.u32 2147483647, %v382_v10  ;;  %v406_v38 = vand.u32 2147483648, %v382_v10 }
 0x346   : > { %v1167_v12 = vpop.eup %795 }
 0x347   : > { %v456_v15 = vmul.f32 %v1167_v12, %v1164_v9  ;;  %v503_v16 = vpop.xlane.xlu1 %502  ;;  %vm461_vm7 = vweird.f32 %v1167_v12  ;;  %v407_v53 = vor.u32 1.1754944e-38, %v406_v38  ;;  %vm405_vm13 = vcmp.eq.f32.partialorder %v404_v37, 8.507059e+37 }
 0x348   : > { %799 = vrcp.f32 %v503_v16  ;;  %vm519_vm10 = vweird.f32 %v503_v16  ;;  %v525_v46 = vand.u32 2147483648, %v503_v16  ;;  %vm1190_vm11 = vmor %vm460_vm4, %vm461_vm7  ;;  %v523_v51 = vand.u32 2147483647, %v503_v16 }
 0x349   : > { %v457_v20 = vsub.f32 1.0, %v456_v15  ;;  %vm591_vm4 = vcmask 7168  }
 0x34a   : > { %v526_v62 = vor.u32 1.1754944e-38, %v525_v46  ;;  %vm524_vm15 = vcmp.eq.f32.partialorder %v523_v51, 8.507059e+37 }
 0x34b   : > { %v798_v17 = vpop.eup %797  ;;  %v458_v28 = vmul.f32 %v1167_v12, %v457_v20 }
 0x34c   : > { %v396_v21 = vmul.f32 %v798_v17, %v382_v10  ;;  %v1171_v22 = vpop.xlane.xlu2 %561  ;;  %v509_v23 = vpop.xlane.xlu0 %508  ;;  %vm401_vm6 = vweird.f32 %v798_v17 }
 0x34d   : > { %801 = vrcp.f32 %v1171_v22  ;;  %v510_v25 = vmul.f32 0.35355338, %v509_v23  ;;  %v459_v40 = vadd.f32 %v1167_v12, %v458_v28  ;;  %vm1182_vm9 = vmor %vm400_vm5, %vm401_vm6  ;;  %v584_v3 = vand.u32 2147483648, %v1171_v22 }
 0x34e   : > { %v397_v24 = vsub.f32 1.0, %v396_v21  ;;  %v800_v26 = vpop.eup %799  ;;  %803 = vpow2.f32 %v393_v18  ;;  %vm578_vm1 = vweird.f32 %v1171_v22  ;;  %v582_v5 = vand.u32 2147483647, %v1171_v22 }
 0x34f   : > { %v515_v30 = vmul.f32 %v800_v26, %v503_v16  ;;  %v511_v33 = vsub.f32 %v510_v25, %v1151_v49  ;;  %vm520_vm8 = vweird.f32 %v800_v26  ;;  %v463_v57 = vsel %vm1190_vm11, %v1167_v12, %v459_v40  ;;  %v589_v16 = vld [vmem:[%s1241_s5] sm:$0xff] }
 0x350   : > { %v398_v29 = vmul.f32 %v798_v17, %v397_v24  ;;  %vm1197_vm12 = vmor %vm519_vm10, %vm520_vm8  ;;  %v468_v2 = vsel %vm465_vm14, %v467_v60, %v463_v57  ;;  %v585_v10 = vor.u32 1.1754944e-38, %v584_v3  ;;  %vm583_vm3 = vcmp.eq.f32.partialorder %v582_v5, 8.507059e+37 }
 0x351   : > { %v516_v35 = vsub.f32 1.0, %v515_v30  ;;  %v512_v39 = vmul.f32 1.442695, %v511_v33 }
 0x352   : > { %v399_v34 = vadd.f32 %v798_v17, %v398_v29 }
 0x353   : > { %v802_v36 = vpop.eup %801  ;;  %v517_v41 = vmul.f32 %v800_v26, %v516_v35  ;;  %805 = vpow2.f32 %v512_v39 }
 0x354   : > { %v574_v42 = vmul.f32 %v802_v36, %v1171_v22  ;;  %v568_v43 = vpop.xlane.xlu2 %567  ;;  %v804_v44 = vpop.eup %803  ;;  %v403_v49 = vsel %vm1182_vm9, %v798_v17, %v399_v34  ;;  %807 = vpow2.f32 %v453_v27  ;;  %vm579_vm0 = vweird.f32 %v802_v36 }
 0x355   : > { %v569_v47 = vmul.f32 0.35355338, %v568_v43  ;;  %v518_v50 = vadd.f32 %v800_v26, %v517_v41  ;;  %v408_v61 = vsel %vm405_vm13, %v407_v53, %v403_v49  ;;  %vm580_vm2 = vmor %vm578_vm1, %vm579_vm0 }
 0x356   : > { %v575_v52 = vsub.f32 1.0, %v574_v42  ;;  %v409_v4 = vmul.f32 %v804_v44, %v408_v61 }
 0x357   : > { %v570_v56 = vsub.f32 %v569_v47, %v1154_v54  ;;  %v522_v58 = vsel %vm1197_vm12, %v800_v26, %v518_v50 }
 0x358   : > { %v576_v59 = vmul.f32 %v802_v36, %v575_v52  ;;  %v527_v54 = vsel %vm524_vm15, %v526_v62, %v522_v58 }
 0x359   : > { %v571_v63 = vmul.f32 1.442695, %v570_v56  ;;  %v806_v1 = vpop.eup %805 }
 0x35a   : > { %v577_v0 = vadd.f32 %v802_v36, %v576_v59  ;;  %v808_v6 = vpop.eup %807  ;;  %v528_v9 = vmul.f32 %v806_v1, %v527_v54 }
 0x35b   : > { %809 = vpow2.f32 %v571_v63  ;;  %v469_v7 = vmul.f32 %v808_v6, %v468_v2 }
 0x35c   : > { %v581_v8 = vsel %vm580_vm2, %v802_v36, %v577_v0 }
 0x35d   : > { %v470_v11 = vadd.f32 %v469_v7, %v409_v4  ;;  %v586_v13 = vsel %vm583_vm3, %v585_v10, %v581_v8 }
 0x35f   : > { %v529_v14 = vadd.f32 %v528_v9, %v470_v11 }
 0x361   : > { %v810_v12 = vpop.eup %809 }
 0x362   : > { %v587_v15 = vmul.f32 %v810_v12, %v586_v13 }
 0x364   : > { %v588_v17 = vadd.f32 %v587_v15, %v529_v14  ;;  %596 = sbr.rel (%p700_p1) target bundleno = 883 (0x373), region = 64 }
 0x366   : > { %v590_v18 = vadd.f32 %v589_v16, %v588_v17 }
 0x368   : > { %592 = vst.msk [vmem:[%s1241_s5] sm:$0xff] %vm591_vm4, %v590_v18 }
 0x36f   : > { %v597_v19 = vld [vmem:[%s1241_s5] sm:$0xff] }
 0x370   : > { %v598_v20 = vmul.f32 0.125, %v597_v19 }
 0x372   : > { %599 = vst.msk [vmem:[%s1241_s5] sm:$0xff] %vm591_vm4, %v598_v20 }
 0x373 PF: > { %s1252_s6 = smov %s1078_s18  ;;  %p17_p4 = scmp.ge.s32.totalorder %s1078_s18, 4  }
 0x374   : > { %s1253_s18 = smov %s965_s19  ;;  %s1254_s19 = smov %s969_s20 }
 0x375   : > { %s1255_s20 = smov %s1088_s26  ;;  %s1256_s21 = smov %s1252_s6 }
 0x376   :  { %19 = sbr.rel (!%p17_p4) target bundleno = 5 (0x5), region = 96 }
 0x37b   :  { %611 = vsyncpa [#allocation3], 1 }
 0x37c   :  { %613 = vsyncpa [#allocation3 + $0x1], 1 }
 0x37d   :  { %614 = vsyncpa [#allocation5], 1 }
 0x37e   :  { %615 = vsyncpa [#allocation8], 1 }

</bundles_post_ra>
